<compile_context>
chip_gen: v7x
topology: tpu7x:2x2x1
jax: 0.10.0
libtpu: 0.0.40
codegen_flags: <defaults>
</compile_context>

<pallas_src>
import jax
import jax.numpy as jnp
from jax import lax
from jax.experimental import pallas as pl
from jax.experimental.pallas import tpu as pltpu

LEAKY_SLOPE = 0.2
EPS = 1e-5


def _make_resblock_kernel(H, W, C, G, has_fold):
  """Builds the fused ResBlock kernel for static (H, W, C, G)."""
  HW = H * W
  Cg = C // G
  # Fuse the 9 conv taps into one K=9*C matmul only when the sublane offsets
  # of the concatenation are bf16 tile-aligned; otherwise fall back to 9
  # accumulated MXU dots (first dot initializes the accumulator).
  fuse_k = (C % 16 == 0)

  def kernel(x_ref, g1_ref, b1_ref, w1_ref, g2_ref, b2_ref, w2_ref, *rest):
    if has_fold:
      fold_ref, o_ref = rest
    else:
      (o_ref,) = rest

    x = x_ref[0].astype(jnp.float32)                        # (C, H*W)

    # Column (w) coordinate of every flattened spatial position (lane axis).
    w_coord = lax.broadcasted_iota(jnp.int32, (1, HW), 1) % W
    mask_left = w_coord >= 1           # tap reads column w-1 (kx == 0)
    mask_right = w_coord <= W - 2      # tap reads column w+1 (kx == 2)

    def group_norm(v, gamma, beta):
      # Two-pass (centered) variance, all statistics in f32.
      inv_n = 1.0 / float(HW * Cg)
      ch_sum = jnp.sum(v, axis=1, keepdims=True)            # (C, 1)
      if has_fold:   # Cg > 1: fold channel sums into groups (tiny (C,C) dot)
        mean_c = jnp.dot(fold_ref[...], ch_sum,
                         preferred_element_type=jnp.float32)
      else:          # Cg == 1 (C <= 32): per-channel stats, no fold needed
        mean_c = ch_sum * inv_n
      vc = v - mean_c
      sq_sum = jnp.sum(vc * vc, axis=1, keepdims=True)      # (C, 1)
      if has_fold:
        var_c = jnp.dot(fold_ref[...], sq_sum,
                        preferred_element_type=jnp.float32)
      else:
        var_c = sq_sum * inv_n
      return vc * lax.rsqrt(var_c + EPS) * gamma + beta

    def leaky_relu(v):
      return jnp.where(v >= 0, v, LEAKY_SLOPE * v)

    def shift_lanes(v, delta):
      # result[:, p] = v[:, p + delta], zero-filled outside [0, HW).
      if delta == 0:
        return v
      if abs(delta) >= HW:
        return jnp.zeros_like(v)
      z = jnp.zeros((v.shape[0], abs(delta)), v.dtype)
      if delta > 0:
        return jnp.concatenate([v[:, delta:], z], axis=1)
      return jnp.concatenate([z, v[:, :HW + delta]], axis=1)

    def conv3x3_same(v, w_ref_):
      # 3x3 "same" conv as shifted-tap matmuls: bf16 operands, f32 accumulate.
      # h-halo handled by the zero fill of shift_lanes; w-halo by the masks.
      vb = v.astype(jnp.bfloat16)
      taps = []
      for ky in range(3):
        for kx in range(3):
          tap = shift_lanes(vb, (ky - 1) * W + (kx - 1))
          if kx == 0:
            tap = jnp.where(mask_left, tap, 0)
          elif kx == 2:
            tap = jnp.where(mask_right, tap, 0)
          taps.append(tap)
      w_all = w_ref_[...]                                   # (C, 9*C) bf16
      if fuse_k:
        patches = jnp.concatenate(taps, axis=0)             # (9*C, H*W) bf16
        return jnp.dot(w_all, patches,
                       preferred_element_type=jnp.float32)  # (C, H*W) f32
      acc = jnp.dot(w_all[:, :C], taps[0],
                    preferred_element_type=jnp.float32)
      for t in range(1, 9):
        acc = acc + jnp.dot(w_all[:, t * C:(t + 1) * C], taps[t],
                            preferred_element_type=jnp.float32)
      return acc

    h = leaky_relu(group_norm(x, g1_ref[...], b1_ref[...]))
    x_skip = h                                              # f32 (C, H*W)
    h = conv3x3_same(h, w1_ref)
    h = leaky_relu(group_norm(h, g2_ref[...], b2_ref[...]))
    h = conv3x3_same(h, w2_ref)
    o_ref[...] = (x_skip + h)[None].astype(o_ref.dtype)

  return kernel


def resblock_forward(x_nchw, params):
  """params = (gamma1 (C,), beta1 (C,), w1_hwio (3,3,C,C), gamma2, beta2, w2_hwio)."""
  g1, b1, w1, g2, b2, w2 = params
  N, C, H, W = x_nchw.shape
  assert H >= 2 and W >= 2
  G = min(C, 32)
  assert C % G == 0
  HW = H * W
  Cg = C // G
  has_fold = Cg > 1

  # Free reshape only -- keep the PyTorch NCHW layout, flatten the spatial
  # dims onto the 128-lane axis. No transposes, no wrapper-side dtype upcast.
  x = x_nchw.reshape(N, C, HW)

  def fuse_w(w_hwio):
    # (ky, kx, ci, co) -> (co, ky, kx, ci) -> (C_out, 9*C_in), bf16 for the MXU.
    return jnp.transpose(w_hwio, (3, 0, 1, 2)).reshape(C, 9 * C).astype(
        jnp.bfloat16)

  w1f, w2f = fuse_w(w1), fuse_w(w2)
  g1c = g1.reshape(C, 1).astype(jnp.float32)
  b1c = b1.reshape(C, 1).astype(jnp.float32)
  g2c = g2.reshape(C, 1).astype(jnp.float32)
  b2c = b2.reshape(C, 1).astype(jnp.float32)

  inputs = [x, g1c, b1c, w1f, g2c, b2c, w2f]
  in_specs = [
      pl.BlockSpec((1, C, HW), lambda n: (n, 0, 0)),   # x (one image / step)
      pl.BlockSpec((C, 1), lambda n: (0, 0)),          # gamma1
      pl.BlockSpec((C, 1), lambda n: (0, 0)),          # beta1
      pl.BlockSpec((C, 9 * C), lambda n: (0, 0)),      # w1 fused (bf16)
      pl.BlockSpec((C, 1), lambda n: (0, 0)),          # gamma2
      pl.BlockSpec((C, 1), lambda n: (0, 0)),          # beta2
      pl.BlockSpec((C, 9 * C), lambda n: (0, 0)),      # w2 fused (bf16)
  ]
  if has_fold:
    # Group-fold/average matrix, only needed when Cg > 1 (C > 32).
    ch = jnp.arange(C)
    same_group = (ch[:, None] // Cg) == (ch[None, :] // Cg)
    fold = same_group.astype(jnp.float32) / float(HW * Cg)
    inputs.append(fold)
    in_specs.append(pl.BlockSpec((C, C), lambda n: (0, 0)))

  # Size the scoped VMEM limit from the problem (v5e default is only 16 MiB).
  est_bytes = (2 * C * HW * 4          # x block + out block (f32)
               + 2 * C * 9 * C * 2     # two fused bf16 weights
               + 9 * C * HW * 2        # shifted taps / im2col slab (bf16)
               + 4 * C * HW * 4)       # live f32 intermediates
  vmem_limit = int(min(100 * 2**20, max(32 * 2**20, 6 * est_bytes)))

  kernel = _make_resblock_kernel(H, W, C, G, has_fold)
  out = pl.pallas_call(
      kernel,
      out_shape=jax.ShapeDtypeStruct((N, C, HW), jnp.float32),
      grid_spec=pltpu.PrefetchScalarGridSpec(
          num_scalar_prefetch=0,
          grid=(N,),
          in_specs=in_specs,
          out_specs=pl.BlockSpec((1, C, HW), lambda n: (n, 0, 0)),
      ),
      compiler_params=pltpu.CompilerParams(
          dimension_semantics=("parallel",),
          vmem_limit_bytes=vmem_limit),
  )(*inputs)
  return out.reshape(N, C, H, W)


def resblock_reference(x_nchw, params, G):
  """Pure-JAX reference mirroring the PyTorch forward (p=0), f32 HIGHEST."""
  g1, b1, w1, g2, b2, w2 = params
  N, C, H, W = x_nchw.shape

  def gn(v, gamma, beta):
    vg = v.reshape(N, G, C // G, H, W)
    mean = vg.mean(axis=(2, 3, 4), keepdims=True)
    var = ((vg - mean) ** 2).mean(axis=(2, 3, 4), keepdims=True)
    vn = ((vg - mean) * lax.rsqrt(var + EPS)).reshape(N, C, H, W)
    return vn * gamma.reshape(1, C, 1, 1) + beta.reshape(1, C, 1, 1)

  def conv(v, w_hwio):
    return lax.conv_general_dilated(
        v, w_hwio, window_strides=(1, 1), padding="SAME",
        dimension_numbers=("NCHW", "HWIO", "NCHW"),
        precision=lax.Precision.HIGHEST)

  def lrelu(v):
    return jnp.where(v >= 0, v, LEAKY_SLOPE * v)

  h = lrelu(gn(x_nchw, g1, b1))
  skip = h
  h = conv(h, w1)
  h = lrelu(gn(h, g2, b2))
  h = conv(h, w2)
  return skip + h


if __name__ == "__main__":
  key = jax.random.PRNGKey(0)
  N, C, H, W = 2, 4, 16, 16
  k = jax.random.split(key, 7)
  x = jax.random.normal(k[0], (N, C, H, W), jnp.float32)
  # deterministic synthetic parameters (GroupNorm affine + 2x conv3x3, no bias)
  g1 = 1.0 + 0.1 * jax.random.normal(k[1], (C,), jnp.float32)
  b1 = 0.1 * jax.random.normal(k[2], (C,), jnp.float32)
  w1 = 0.2 * jax.random.normal(k[3], (3, 3, C, C), jnp.float32)   # HWIO
  g2 = 1.0 + 0.1 * jax.random.normal(k[4], (C,), jnp.float32)
  b2 = 0.1 * jax.random.normal(k[5], (C,), jnp.float32)
  w2 = 0.2 * jax.random.normal(k[6], (3, 3, C, C), jnp.float32)   # HWIO
  params = (g1, b1, w1, g2, b2, w2)

  out = resblock_forward(x, params)
  out = jax.block_until_ready(out)

  ref = resblock_reference(x, params, G=min(C, 32))
  assert out.shape == (N, C, H, W), out.shape
  # bf16 conv operands (f32 accumulation) vs an f32 HIGHEST-precision
  # reference: allow atol=2e-2 / rtol=1e-2.
  err = jnp.abs(out - ref)
  tol = 2e-2 + 1e-2 * jnp.abs(ref)
  if not bool(jnp.all(err <= tol)):
    raise AssertionError(
        f"kernel mismatch vs reference: max_err={float(jnp.max(err))}")
  print("KERNEL_OK")
</pallas_src>

<mosaic_0001>
module attributes {stable_mosaic.version = 11 : i64} {
  func.func @kernel(%arg0: i32, %arg1: memref<1x4x256xf32, #tpu.memory_space<vmem>>, %arg2: memref<4x1xf32, #tpu.memory_space<vmem>>, %arg3: memref<4x1xf32, #tpu.memory_space<vmem>>, %arg4: memref<4x36xbf16, #tpu.memory_space<vmem>>, %arg5: memref<4x1xf32, #tpu.memory_space<vmem>>, %arg6: memref<4x1xf32, #tpu.memory_space<vmem>>, %arg7: memref<4x36xbf16, #tpu.memory_space<vmem>>, %arg8: memref<1x4x256xf32, #tpu.memory_space<vmem>>) attributes {dimension_semantics = [#tpu.dimension_semantics<parallel>], iteration_bounds = array<i64: 2>, scalar_prefetch = 0 : i64, scratch_operands = 0 : i64, tpu.core_type = #tpu.core_type<tc>, window_params = [{transform_indices = @transform_0, window_bounds = array<i64: 1, 4, 256>}, {pipeline_mode = #tpu.pipeline_mode<synchronous>, transform_indices = @transform_1, window_bounds = array<i64: 4, 1>}, {pipeline_mode = #tpu.pipeline_mode<synchronous>, transform_indices = @transform_2, window_bounds = array<i64: 4, 1>}, {pipeline_mode = #tpu.pipeline_mode<synchronous>, transform_indices = @transform_3, window_bounds = array<i64: 4, 36>}, {pipeline_mode = #tpu.pipeline_mode<synchronous>, transform_indices = @transform_4, window_bounds = array<i64: 4, 1>}, {pipeline_mode = #tpu.pipeline_mode<synchronous>, transform_indices = @transform_5, window_bounds = array<i64: 4, 1>}, {pipeline_mode = #tpu.pipeline_mode<synchronous>, transform_indices = @transform_6, window_bounds = array<i64: 4, 36>}, {transform_indices = @transform_7, window_bounds = array<i64: 1, 4, 256>}]} {
    %c0 = arith.constant 0 : index
    %c0_0 = arith.constant 0 : index
    %c0_1 = arith.constant 0 : index
    %0 = vector.load %arg1[%c0, %c0_0, %c0_1] : memref<1x4x256xf32, #tpu.memory_space<vmem>>, vector<1x4x256xf32>
    %1 = vector.shape_cast %0 : vector<1x4x256xf32> to vector<4x256xf32>
    %2 = tpu.iota {dimensions = array<i32: 1>} : vector<1x256xi32>
    %c16_i32 = arith.constant 16 : i32
    %c0_i32 = arith.constant 0 : i32
    %3 = arith.cmpi eq, %c16_i32, %c0_i32 : i32
    %c1_i32 = arith.constant 1 : i32
    %4 = arith.select %3, %c1_i32, %c16_i32 : i32
    %5 = vector.broadcast %4 : i32 to vector<1x256xi32>
    %6 = arith.remsi %2, %5 : vector<1x256xi32>
    %c0_i32_2 = arith.constant 0 : i32
    %7 = vector.broadcast %c0_i32_2 : i32 to vector<1x256xi32>
    %8 = arith.cmpi ne, %6, %7 : vector<1x256xi32>
    %c0_i32_3 = arith.constant 0 : i32
    %9 = vector.broadcast %c0_i32_3 : i32 to vector<1x256xi32>
    %10 = arith.cmpi slt, %6, %9 : vector<1x256xi32>
    %c0_i32_4 = arith.constant 0 : i32
    %11 = arith.cmpi slt, %4, %c0_i32_4 : i32
    %12 = vector.broadcast %11 : i1 to vector<1x256xi1>
    %13 = vector.broadcast %12 : vector<1x256xi1> to vector<1x256xi1>
    %14 = arith.xori %10, %13 : vector<1x256xi1>
    %15 = arith.andi %14, %8 : vector<1x256xi1>
    %16 = vector.broadcast %4 : i32 to vector<1x256xi32>
    %17 = arith.addi %6, %16 : vector<1x256xi32>
    %18 = arith.select %15, %17, %6 : vector<1x256xi1>, vector<1x256xi32>
    %c1_i32_5 = arith.constant 1 : i32
    %19 = vector.broadcast %c1_i32_5 : i32 to vector<1x256xi32>
    %20 = arith.cmpi sge, %18, %19 : vector<1x256xi32>
    %c14_i32 = arith.constant 14 : i32
    %21 = vector.broadcast %c14_i32 : i32 to vector<1x256xi32>
    %22 = arith.cmpi sle, %18, %21 : vector<1x256xi32>
    %c0_6 = arith.constant 0 : index
    %c0_7 = arith.constant 0 : index
    %23 = vector.load %arg2[%c0_6, %c0_7] : memref<4x1xf32, #tpu.memory_space<vmem>>, vector<4x1xf32>
    %c0_8 = arith.constant 0 : index
    %c0_9 = arith.constant 0 : index
    %24 = vector.load %arg3[%c0_8, %c0_9] : memref<4x1xf32, #tpu.memory_space<vmem>>, vector<4x1xf32>
    %cst = arith.constant dense<0.000000e+00> : vector<4xf32>
    %25 = vector.multi_reduction <add>, %1, %cst [1] : vector<4x256xf32> to vector<4xf32>
    %26 = vector.shape_cast %25 : vector<4xf32> to vector<4x1xf32>
    %cst_10 = arith.constant 3.906250e-03 : f32
    %27 = vector.broadcast %cst_10 : f32 to vector<4x1xf32>
    %28 = arith.mulf %26, %27 : vector<4x1xf32>
    %29 = vector.broadcast %28 : vector<4x1xf32> to vector<4x256xf32>
    %30 = arith.subf %1, %29 : vector<4x256xf32>
    %31 = arith.mulf %30, %30 : vector<4x256xf32>
    %cst_11 = arith.constant dense<0.000000e+00> : vector<4xf32>
    %32 = vector.multi_reduction <add>, %31, %cst_11 [1] : vector<4x256xf32> to vector<4xf32>
    %33 = vector.shape_cast %32 : vector<4xf32> to vector<4x1xf32>
    %cst_12 = arith.constant 3.906250e-03 : f32
    %34 = vector.broadcast %cst_12 : f32 to vector<4x1xf32>
    %35 = arith.mulf %33, %34 : vector<4x1xf32>
    %cst_13 = arith.constant 9.99999974E-6 : f32
    %36 = vector.broadcast %cst_13 : f32 to vector<4x1xf32>
    %37 = arith.addf %35, %36 : vector<4x1xf32>
    %38 = math.rsqrt %37 : vector<4x1xf32>
    %39 = vector.broadcast %38 : vector<4x1xf32> to vector<4x256xf32>
    %40 = arith.mulf %30, %39 : vector<4x256xf32>
    %41 = vector.broadcast %23 : vector<4x1xf32> to vector<4x256xf32>
    %42 = arith.mulf %40, %41 : vector<4x256xf32>
    %43 = vector.broadcast %24 : vector<4x1xf32> to vector<4x256xf32>
    %44 = arith.addf %42, %43 : vector<4x256xf32>
    %cst_14 = arith.constant 0.000000e+00 : f32
    %45 = vector.broadcast %cst_14 : f32 to vector<4x256xf32>
    %46 = arith.cmpf oge, %44, %45 : vector<4x256xf32>
    %cst_15 = arith.constant 2.000000e-01 : f32
    %47 = vector.broadcast %cst_15 : f32 to vector<4x256xf32>
    %48 = arith.mulf %47, %44 : vector<4x256xf32>
    %49 = arith.select %46, %44, %48 : vector<4x256xi1>, vector<4x256xf32>
    %50 = arith.truncf %49 : vector<4x256xf32> to vector<4x256xbf16>
    %cst_16 = arith.constant 0.000000e+00 : bf16
    %51 = vector.broadcast %cst_16 : bf16 to vector<4x17xbf16>
    %52 = vector.extract_strided_slice %50 {offsets = [0, 0], sizes = [4, 239], strides = [1, 1]} : vector<4x256xbf16> to vector<4x239xbf16>
    %53 = tpu.concatenate %51, %52 in 1 : vector<4x17xbf16>, vector<4x239xbf16> -> vector<4x256xbf16>
    %c0_i32_17 = arith.constant 0 : i32
    %54 = arith.sitofp %c0_i32_17 : i32 to bf16
    %55 = vector.shape_cast %20 : vector<1x256xi1> to vector<1x256xi1>
    %56 = vector.broadcast %55 : vector<1x256xi1> to vector<4x256xi1>
    %57 = vector.broadcast %54 : bf16 to vector<4x256xbf16>
    %58 = arith.select %56, %53, %57 : vector<4x256xi1>, vector<4x256xbf16>
    %cst_18 = arith.constant 0.000000e+00 : bf16
    %59 = vector.broadcast %cst_18 : bf16 to vector<4x16xbf16>
    %60 = vector.extract_strided_slice %50 {offsets = [0, 0], sizes = [4, 240], strides = [1, 1]} : vector<4x256xbf16> to vector<4x240xbf16>
    %61 = tpu.concatenate %59, %60 in 1 : vector<4x16xbf16>, vector<4x240xbf16> -> vector<4x256xbf16>
    %cst_19 = arith.constant 0.000000e+00 : bf16
    %62 = vector.broadcast %cst_19 : bf16 to vector<4x15xbf16>
    %63 = vector.extract_strided_slice %50 {offsets = [0, 0], sizes = [4, 241], strides = [1, 1]} : vector<4x256xbf16> to vector<4x241xbf16>
    %64 = tpu.concatenate %62, %63 in 1 : vector<4x15xbf16>, vector<4x241xbf16> -> vector<4x256xbf16>
    %c0_i32_20 = arith.constant 0 : i32
    %65 = arith.sitofp %c0_i32_20 : i32 to bf16
    %66 = vector.shape_cast %22 : vector<1x256xi1> to vector<1x256xi1>
    %67 = vector.broadcast %66 : vector<1x256xi1> to vector<4x256xi1>
    %68 = vector.broadcast %65 : bf16 to vector<4x256xbf16>
    %69 = arith.select %67, %64, %68 : vector<4x256xi1>, vector<4x256xbf16>
    %cst_21 = arith.constant 0.000000e+00 : bf16
    %70 = vector.broadcast %cst_21 : bf16 to vector<4x1xbf16>
    %71 = vector.extract_strided_slice %50 {offsets = [0, 0], sizes = [4, 255], strides = [1, 1]} : vector<4x256xbf16> to vector<4x255xbf16>
    %72 = tpu.concatenate %70, %71 in 1 : vector<4x1xbf16>, vector<4x255xbf16> -> vector<4x256xbf16>
    %c0_i32_22 = arith.constant 0 : i32
    %73 = arith.sitofp %c0_i32_22 : i32 to bf16
    %74 = vector.shape_cast %20 : vector<1x256xi1> to vector<1x256xi1>
    %75 = vector.broadcast %74 : vector<1x256xi1> to vector<4x256xi1>
    %76 = vector.broadcast %73 : bf16 to vector<4x256xbf16>
    %77 = arith.select %75, %72, %76 : vector<4x256xi1>, vector<4x256xbf16>
    %cst_23 = arith.constant 0.000000e+00 : bf16
    %78 = vector.broadcast %cst_23 : bf16 to vector<4x1xbf16>
    %79 = vector.extract_strided_slice %50 {offsets = [0, 1], sizes = [4, 255], strides = [1, 1]} : vector<4x256xbf16> to vector<4x255xbf16>
    %80 = tpu.concatenate %79, %78 in 1 : vector<4x255xbf16>, vector<4x1xbf16> -> vector<4x256xbf16>
    %c0_i32_24 = arith.constant 0 : i32
    %81 = arith.sitofp %c0_i32_24 : i32 to bf16
    %82 = vector.shape_cast %22 : vector<1x256xi1> to vector<1x256xi1>
    %83 = vector.broadcast %82 : vector<1x256xi1> to vector<4x256xi1>
    %84 = vector.broadcast %81 : bf16 to vector<4x256xbf16>
    %85 = arith.select %83, %80, %84 : vector<4x256xi1>, vector<4x256xbf16>
    %cst_25 = arith.constant 0.000000e+00 : bf16
    %86 = vector.broadcast %cst_25 : bf16 to vector<4x15xbf16>
    %87 = vector.extract_strided_slice %50 {offsets = [0, 15], sizes = [4, 241], strides = [1, 1]} : vector<4x256xbf16> to vector<4x241xbf16>
    %88 = tpu.concatenate %87, %86 in 1 : vector<4x241xbf16>, vector<4x15xbf16> -> vector<4x256xbf16>
    %c0_i32_26 = arith.constant 0 : i32
    %89 = arith.sitofp %c0_i32_26 : i32 to bf16
    %90 = vector.shape_cast %20 : vector<1x256xi1> to vector<1x256xi1>
    %91 = vector.broadcast %90 : vector<1x256xi1> to vector<4x256xi1>
    %92 = vector.broadcast %89 : bf16 to vector<4x256xbf16>
    %93 = arith.select %91, %88, %92 : vector<4x256xi1>, vector<4x256xbf16>
    %cst_27 = arith.constant 0.000000e+00 : bf16
    %94 = vector.broadcast %cst_27 : bf16 to vector<4x16xbf16>
    %95 = vector.extract_strided_slice %50 {offsets = [0, 16], sizes = [4, 240], strides = [1, 1]} : vector<4x256xbf16> to vector<4x240xbf16>
    %96 = tpu.concatenate %95, %94 in 1 : vector<4x240xbf16>, vector<4x16xbf16> -> vector<4x256xbf16>
    %cst_28 = arith.constant 0.000000e+00 : bf16
    %97 = vector.broadcast %cst_28 : bf16 to vector<4x17xbf16>
    %98 = vector.extract_strided_slice %50 {offsets = [0, 17], sizes = [4, 239], strides = [1, 1]} : vector<4x256xbf16> to vector<4x239xbf16>
    %99 = tpu.concatenate %98, %97 in 1 : vector<4x239xbf16>, vector<4x17xbf16> -> vector<4x256xbf16>
    %c0_i32_29 = arith.constant 0 : i32
    %100 = arith.sitofp %c0_i32_29 : i32 to bf16
    %101 = vector.shape_cast %22 : vector<1x256xi1> to vector<1x256xi1>
    %102 = vector.broadcast %101 : vector<1x256xi1> to vector<4x256xi1>
    %103 = vector.broadcast %100 : bf16 to vector<4x256xbf16>
    %104 = arith.select %102, %99, %103 : vector<4x256xi1>, vector<4x256xbf16>
    %c0_30 = arith.constant 0 : index
    %c0_31 = arith.constant 0 : index
    %105 = vector.load %arg4[%c0_30, %c0_31] : memref<4x36xbf16, #tpu.memory_space<vmem>>, vector<4x36xbf16>
    %106 = vector.extract_strided_slice %105 {offsets = [0, 0], sizes = [4, 4], strides = [1, 1]} : vector<4x36xbf16> to vector<4x4xbf16>
    %cst_32 = arith.constant dense<0.000000e+00> : vector<4x256xf32>
    %107 = tpu.matmul %106, %58, %cst_32 {dimension_numbers = #tpu.dot_dimension_numbers<[1], [0], [0], [1], [0, 0, 1, 1], [], []>} : vector<4x4xbf16>, vector<4x256xbf16>, vector<4x256xf32> -> vector<4x256xf32>
    %108 = vector.extract_strided_slice %105 {offsets = [0, 4], sizes = [4, 4], strides = [1, 1]} : vector<4x36xbf16> to vector<4x4xbf16>
    %cst_33 = arith.constant dense<0.000000e+00> : vector<4x256xf32>
    %109 = tpu.matmul %108, %61, %cst_33 {dimension_numbers = #tpu.dot_dimension_numbers<[1], [0], [0], [1], [0, 0, 1, 1], [], []>} : vector<4x4xbf16>, vector<4x256xbf16>, vector<4x256xf32> -> vector<4x256xf32>
    %110 = arith.addf %107, %109 : vector<4x256xf32>
    %111 = vector.extract_strided_slice %105 {offsets = [0, 8], sizes = [4, 4], strides = [1, 1]} : vector<4x36xbf16> to vector<4x4xbf16>
    %cst_34 = arith.constant dense<0.000000e+00> : vector<4x256xf32>
    %112 = tpu.matmul %111, %69, %cst_34 {dimension_numbers = #tpu.dot_dimension_numbers<[1], [0], [0], [1], [0, 0, 1, 1], [], []>} : vector<4x4xbf16>, vector<4x256xbf16>, vector<4x256xf32> -> vector<4x256xf32>
    %113 = arith.addf %110, %112 : vector<4x256xf32>
    %114 = vector.extract_strided_slice %105 {offsets = [0, 12], sizes = [4, 4], strides = [1, 1]} : vector<4x36xbf16> to vector<4x4xbf16>
    %cst_35 = arith.constant dense<0.000000e+00> : vector<4x256xf32>
    %115 = tpu.matmul %114, %77, %cst_35 {dimension_numbers = #tpu.dot_dimension_numbers<[1], [0], [0], [1], [0, 0, 1, 1], [], []>} : vector<4x4xbf16>, vector<4x256xbf16>, vector<4x256xf32> -> vector<4x256xf32>
    %116 = arith.addf %113, %115 : vector<4x256xf32>
    %117 = vector.extract_strided_slice %105 {offsets = [0, 16], sizes = [4, 4], strides = [1, 1]} : vector<4x36xbf16> to vector<4x4xbf16>
    %cst_36 = arith.constant dense<0.000000e+00> : vector<4x256xf32>
    %118 = tpu.matmul %117, %50, %cst_36 {dimension_numbers = #tpu.dot_dimension_numbers<[1], [0], [0], [1], [0, 0, 1, 1], [], []>} : vector<4x4xbf16>, vector<4x256xbf16>, vector<4x256xf32> -> vector<4x256xf32>
    %119 = arith.addf %116, %118 : vector<4x256xf32>
    %120 = vector.extract_strided_slice %105 {offsets = [0, 20], sizes = [4, 4], strides = [1, 1]} : vector<4x36xbf16> to vector<4x4xbf16>
    %cst_37 = arith.constant dense<0.000000e+00> : vector<4x256xf32>
    %121 = tpu.matmul %120, %85, %cst_37 {dimension_numbers = #tpu.dot_dimension_numbers<[1], [0], [0], [1], [0, 0, 1, 1], [], []>} : vector<4x4xbf16>, vector<4x256xbf16>, vector<4x256xf32> -> vector<4x256xf32>
    %122 = arith.addf %119, %121 : vector<4x256xf32>
    %123 = vector.extract_strided_slice %105 {offsets = [0, 24], sizes = [4, 4], strides = [1, 1]} : vector<4x36xbf16> to vector<4x4xbf16>
    %cst_38 = arith.constant dense<0.000000e+00> : vector<4x256xf32>
    %124 = tpu.matmul %123, %93, %cst_38 {dimension_numbers = #tpu.dot_dimension_numbers<[1], [0], [0], [1], [0, 0, 1, 1], [], []>} : vector<4x4xbf16>, vector<4x256xbf16>, vector<4x256xf32> -> vector<4x256xf32>
    %125 = arith.addf %122, %124 : vector<4x256xf32>
    %126 = vector.extract_strided_slice %105 {offsets = [0, 28], sizes = [4, 4], strides = [1, 1]} : vector<4x36xbf16> to vector<4x4xbf16>
    %cst_39 = arith.constant dense<0.000000e+00> : vector<4x256xf32>
    %127 = tpu.matmul %126, %96, %cst_39 {dimension_numbers = #tpu.dot_dimension_numbers<[1], [0], [0], [1], [0, 0, 1, 1], [], []>} : vector<4x4xbf16>, vector<4x256xbf16>, vector<4x256xf32> -> vector<4x256xf32>
    %128 = arith.addf %125, %127 : vector<4x256xf32>
    %129 = vector.extract_strided_slice %105 {offsets = [0, 32], sizes = [4, 4], strides = [1, 1]} : vector<4x36xbf16> to vector<4x4xbf16>
    %cst_40 = arith.constant dense<0.000000e+00> : vector<4x256xf32>
    %130 = tpu.matmul %129, %104, %cst_40 {dimension_numbers = #tpu.dot_dimension_numbers<[1], [0], [0], [1], [0, 0, 1, 1], [], []>} : vector<4x4xbf16>, vector<4x256xbf16>, vector<4x256xf32> -> vector<4x256xf32>
    %131 = arith.addf %128, %130 : vector<4x256xf32>
    %c0_41 = arith.constant 0 : index
    %c0_42 = arith.constant 0 : index
    %132 = vector.load %arg5[%c0_41, %c0_42] : memref<4x1xf32, #tpu.memory_space<vmem>>, vector<4x1xf32>
    %c0_43 = arith.constant 0 : index
    %c0_44 = arith.constant 0 : index
    %133 = vector.load %arg6[%c0_43, %c0_44] : memref<4x1xf32, #tpu.memory_space<vmem>>, vector<4x1xf32>
    %cst_45 = arith.constant dense<0.000000e+00> : vector<4xf32>
    %134 = vector.multi_reduction <add>, %131, %cst_45 [1] : vector<4x256xf32> to vector<4xf32>
    %135 = vector.shape_cast %134 : vector<4xf32> to vector<4x1xf32>
    %cst_46 = arith.constant 3.906250e-03 : f32
    %136 = vector.broadcast %cst_46 : f32 to vector<4x1xf32>
    %137 = arith.mulf %135, %136 : vector<4x1xf32>
    %138 = vector.broadcast %137 : vector<4x1xf32> to vector<4x256xf32>
    %139 = arith.subf %131, %138 : vector<4x256xf32>
    %140 = arith.mulf %139, %139 : vector<4x256xf32>
    %cst_47 = arith.constant dense<0.000000e+00> : vector<4xf32>
    %141 = vector.multi_reduction <add>, %140, %cst_47 [1] : vector<4x256xf32> to vector<4xf32>
    %142 = vector.shape_cast %141 : vector<4xf32> to vector<4x1xf32>
    %cst_48 = arith.constant 3.906250e-03 : f32
    %143 = vector.broadcast %cst_48 : f32 to vector<4x1xf32>
    %144 = arith.mulf %142, %143 : vector<4x1xf32>
    %cst_49 = arith.constant 9.99999974E-6 : f32
    %145 = vector.broadcast %cst_49 : f32 to vector<4x1xf32>
    %146 = arith.addf %144, %145 : vector<4x1xf32>
    %147 = math.rsqrt %146 : vector<4x1xf32>
    %148 = vector.broadcast %147 : vector<4x1xf32> to vector<4x256xf32>
    %149 = arith.mulf %139, %148 : vector<4x256xf32>
    %150 = vector.broadcast %132 : vector<4x1xf32> to vector<4x256xf32>
    %151 = arith.mulf %149, %150 : vector<4x256xf32>
    %152 = vector.broadcast %133 : vector<4x1xf32> to vector<4x256xf32>
    %153 = arith.addf %151, %152 : vector<4x256xf32>
    %cst_50 = arith.constant 0.000000e+00 : f32
    %154 = vector.broadcast %cst_50 : f32 to vector<4x256xf32>
    %155 = arith.cmpf oge, %153, %154 : vector<4x256xf32>
    %cst_51 = arith.constant 2.000000e-01 : f32
    %156 = vector.broadcast %cst_51 : f32 to vector<4x256xf32>
    %157 = arith.mulf %156, %153 : vector<4x256xf32>
    %158 = arith.select %155, %153, %157 : vector<4x256xi1>, vector<4x256xf32>
    %159 = arith.truncf %158 : vector<4x256xf32> to vector<4x256xbf16>
    %cst_52 = arith.constant 0.000000e+00 : bf16
    %160 = vector.broadcast %cst_52 : bf16 to vector<4x17xbf16>
    %161 = vector.extract_strided_slice %159 {offsets = [0, 0], sizes = [4, 239], strides = [1, 1]} : vector<4x256xbf16> to vector<4x239xbf16>
    %162 = tpu.concatenate %160, %161 in 1 : vector<4x17xbf16>, vector<4x239xbf16> -> vector<4x256xbf16>
    %c0_i32_53 = arith.constant 0 : i32
    %163 = arith.sitofp %c0_i32_53 : i32 to bf16
    %164 = vector.shape_cast %20 : vector<1x256xi1> to vector<1x256xi1>
    %165 = vector.broadcast %164 : vector<1x256xi1> to vector<4x256xi1>
    %166 = vector.broadcast %163 : bf16 to vector<4x256xbf16>
    %167 = arith.select %165, %162, %166 : vector<4x256xi1>, vector<4x256xbf16>
    %cst_54 = arith.constant 0.000000e+00 : bf16
    %168 = vector.broadcast %cst_54 : bf16 to vector<4x16xbf16>
    %169 = vector.extract_strided_slice %159 {offsets = [0, 0], sizes = [4, 240], strides = [1, 1]} : vector<4x256xbf16> to vector<4x240xbf16>
    %170 = tpu.concatenate %168, %169 in 1 : vector<4x16xbf16>, vector<4x240xbf16> -> vector<4x256xbf16>
    %cst_55 = arith.constant 0.000000e+00 : bf16
    %171 = vector.broadcast %cst_55 : bf16 to vector<4x15xbf16>
    %172 = vector.extract_strided_slice %159 {offsets = [0, 0], sizes = [4, 241], strides = [1, 1]} : vector<4x256xbf16> to vector<4x241xbf16>
    %173 = tpu.concatenate %171, %172 in 1 : vector<4x15xbf16>, vector<4x241xbf16> -> vector<4x256xbf16>
    %c0_i32_56 = arith.constant 0 : i32
    %174 = arith.sitofp %c0_i32_56 : i32 to bf16
    %175 = vector.shape_cast %22 : vector<1x256xi1> to vector<1x256xi1>
    %176 = vector.broadcast %175 : vector<1x256xi1> to vector<4x256xi1>
    %177 = vector.broadcast %174 : bf16 to vector<4x256xbf16>
    %178 = arith.select %176, %173, %177 : vector<4x256xi1>, vector<4x256xbf16>
    %cst_57 = arith.constant 0.000000e+00 : bf16
    %179 = vector.broadcast %cst_57 : bf16 to vector<4x1xbf16>
    %180 = vector.extract_strided_slice %159 {offsets = [0, 0], sizes = [4, 255], strides = [1, 1]} : vector<4x256xbf16> to vector<4x255xbf16>
    %181 = tpu.concatenate %179, %180 in 1 : vector<4x1xbf16>, vector<4x255xbf16> -> vector<4x256xbf16>
    %c0_i32_58 = arith.constant 0 : i32
    %182 = arith.sitofp %c0_i32_58 : i32 to bf16
    %183 = vector.shape_cast %20 : vector<1x256xi1> to vector<1x256xi1>
    %184 = vector.broadcast %183 : vector<1x256xi1> to vector<4x256xi1>
    %185 = vector.broadcast %182 : bf16 to vector<4x256xbf16>
    %186 = arith.select %184, %181, %185 : vector<4x256xi1>, vector<4x256xbf16>
    %cst_59 = arith.constant 0.000000e+00 : bf16
    %187 = vector.broadcast %cst_59 : bf16 to vector<4x1xbf16>
    %188 = vector.extract_strided_slice %159 {offsets = [0, 1], sizes = [4, 255], strides = [1, 1]} : vector<4x256xbf16> to vector<4x255xbf16>
    %189 = tpu.concatenate %188, %187 in 1 : vector<4x255xbf16>, vector<4x1xbf16> -> vector<4x256xbf16>
    %c0_i32_60 = arith.constant 0 : i32
    %190 = arith.sitofp %c0_i32_60 : i32 to bf16
    %191 = vector.shape_cast %22 : vector<1x256xi1> to vector<1x256xi1>
    %192 = vector.broadcast %191 : vector<1x256xi1> to vector<4x256xi1>
    %193 = vector.broadcast %190 : bf16 to vector<4x256xbf16>
    %194 = arith.select %192, %189, %193 : vector<4x256xi1>, vector<4x256xbf16>
    %cst_61 = arith.constant 0.000000e+00 : bf16
    %195 = vector.broadcast %cst_61 : bf16 to vector<4x15xbf16>
    %196 = vector.extract_strided_slice %159 {offsets = [0, 15], sizes = [4, 241], strides = [1, 1]} : vector<4x256xbf16> to vector<4x241xbf16>
    %197 = tpu.concatenate %196, %195 in 1 : vector<4x241xbf16>, vector<4x15xbf16> -> vector<4x256xbf16>
    %c0_i32_62 = arith.constant 0 : i32
    %198 = arith.sitofp %c0_i32_62 : i32 to bf16
    %199 = vector.shape_cast %20 : vector<1x256xi1> to vector<1x256xi1>
    %200 = vector.broadcast %199 : vector<1x256xi1> to vector<4x256xi1>
    %201 = vector.broadcast %198 : bf16 to vector<4x256xbf16>
    %202 = arith.select %200, %197, %201 : vector<4x256xi1>, vector<4x256xbf16>
    %cst_63 = arith.constant 0.000000e+00 : bf16
    %203 = vector.broadcast %cst_63 : bf16 to vector<4x16xbf16>
    %204 = vector.extract_strided_slice %159 {offsets = [0, 16], sizes = [4, 240], strides = [1, 1]} : vector<4x256xbf16> to vector<4x240xbf16>
    %205 = tpu.concatenate %204, %203 in 1 : vector<4x240xbf16>, vector<4x16xbf16> -> vector<4x256xbf16>
    %cst_64 = arith.constant 0.000000e+00 : bf16
    %206 = vector.broadcast %cst_64 : bf16 to vector<4x17xbf16>
    %207 = vector.extract_strided_slice %159 {offsets = [0, 17], sizes = [4, 239], strides = [1, 1]} : vector<4x256xbf16> to vector<4x239xbf16>
    %208 = tpu.concatenate %207, %206 in 1 : vector<4x239xbf16>, vector<4x17xbf16> -> vector<4x256xbf16>
    %c0_i32_65 = arith.constant 0 : i32
    %209 = arith.sitofp %c0_i32_65 : i32 to bf16
    %210 = vector.shape_cast %22 : vector<1x256xi1> to vector<1x256xi1>
    %211 = vector.broadcast %210 : vector<1x256xi1> to vector<4x256xi1>
    %212 = vector.broadcast %209 : bf16 to vector<4x256xbf16>
    %213 = arith.select %211, %208, %212 : vector<4x256xi1>, vector<4x256xbf16>
    %c0_66 = arith.constant 0 : index
    %c0_67 = arith.constant 0 : index
    %214 = vector.load %arg7[%c0_66, %c0_67] : memref<4x36xbf16, #tpu.memory_space<vmem>>, vector<4x36xbf16>
    %215 = vector.extract_strided_slice %214 {offsets = [0, 0], sizes = [4, 4], strides = [1, 1]} : vector<4x36xbf16> to vector<4x4xbf16>
    %cst_68 = arith.constant dense<0.000000e+00> : vector<4x256xf32>
    %216 = tpu.matmul %215, %167, %cst_68 {dimension_numbers = #tpu.dot_dimension_numbers<[1], [0], [0], [1], [0, 0, 1, 1], [], []>} : vector<4x4xbf16>, vector<4x256xbf16>, vector<4x256xf32> -> vector<4x256xf32>
    %217 = vector.extract_strided_slice %214 {offsets = [0, 4], sizes = [4, 4], strides = [1, 1]} : vector<4x36xbf16> to vector<4x4xbf16>
    %cst_69 = arith.constant dense<0.000000e+00> : vector<4x256xf32>
    %218 = tpu.matmul %217, %170, %cst_69 {dimension_numbers = #tpu.dot_dimension_numbers<[1], [0], [0], [1], [0, 0, 1, 1], [], []>} : vector<4x4xbf16>, vector<4x256xbf16>, vector<4x256xf32> -> vector<4x256xf32>
    %219 = arith.addf %216, %218 : vector<4x256xf32>
    %220 = vector.extract_strided_slice %214 {offsets = [0, 8], sizes = [4, 4], strides = [1, 1]} : vector<4x36xbf16> to vector<4x4xbf16>
    %cst_70 = arith.constant dense<0.000000e+00> : vector<4x256xf32>
    %221 = tpu.matmul %220, %178, %cst_70 {dimension_numbers = #tpu.dot_dimension_numbers<[1], [0], [0], [1], [0, 0, 1, 1], [], []>} : vector<4x4xbf16>, vector<4x256xbf16>, vector<4x256xf32> -> vector<4x256xf32>
    %222 = arith.addf %219, %221 : vector<4x256xf32>
    %223 = vector.extract_strided_slice %214 {offsets = [0, 12], sizes = [4, 4], strides = [1, 1]} : vector<4x36xbf16> to vector<4x4xbf16>
    %cst_71 = arith.constant dense<0.000000e+00> : vector<4x256xf32>
    %224 = tpu.matmul %223, %186, %cst_71 {dimension_numbers = #tpu.dot_dimension_numbers<[1], [0], [0], [1], [0, 0, 1, 1], [], []>} : vector<4x4xbf16>, vector<4x256xbf16>, vector<4x256xf32> -> vector<4x256xf32>
    %225 = arith.addf %222, %224 : vector<4x256xf32>
    %226 = vector.extract_strided_slice %214 {offsets = [0, 16], sizes = [4, 4], strides = [1, 1]} : vector<4x36xbf16> to vector<4x4xbf16>
    %cst_72 = arith.constant dense<0.000000e+00> : vector<4x256xf32>
    %227 = tpu.matmul %226, %159, %cst_72 {dimension_numbers = #tpu.dot_dimension_numbers<[1], [0], [0], [1], [0, 0, 1, 1], [], []>} : vector<4x4xbf16>, vector<4x256xbf16>, vector<4x256xf32> -> vector<4x256xf32>
    %228 = arith.addf %225, %227 : vector<4x256xf32>
    %229 = vector.extract_strided_slice %214 {offsets = [0, 20], sizes = [4, 4], strides = [1, 1]} : vector<4x36xbf16> to vector<4x4xbf16>
    %cst_73 = arith.constant dense<0.000000e+00> : vector<4x256xf32>
    %230 = tpu.matmul %229, %194, %cst_73 {dimension_numbers = #tpu.dot_dimension_numbers<[1], [0], [0], [1], [0, 0, 1, 1], [], []>} : vector<4x4xbf16>, vector<4x256xbf16>, vector<4x256xf32> -> vector<4x256xf32>
    %231 = arith.addf %228, %230 : vector<4x256xf32>
    %232 = vector.extract_strided_slice %214 {offsets = [0, 24], sizes = [4, 4], strides = [1, 1]} : vector<4x36xbf16> to vector<4x4xbf16>
    %cst_74 = arith.constant dense<0.000000e+00> : vector<4x256xf32>
    %233 = tpu.matmul %232, %202, %cst_74 {dimension_numbers = #tpu.dot_dimension_numbers<[1], [0], [0], [1], [0, 0, 1, 1], [], []>} : vector<4x4xbf16>, vector<4x256xbf16>, vector<4x256xf32> -> vector<4x256xf32>
    %234 = arith.addf %231, %233 : vector<4x256xf32>
    %235 = vector.extract_strided_slice %214 {offsets = [0, 28], sizes = [4, 4], strides = [1, 1]} : vector<4x36xbf16> to vector<4x4xbf16>
    %cst_75 = arith.constant dense<0.000000e+00> : vector<4x256xf32>
    %236 = tpu.matmul %235, %205, %cst_75 {dimension_numbers = #tpu.dot_dimension_numbers<[1], [0], [0], [1], [0, 0, 1, 1], [], []>} : vector<4x4xbf16>, vector<4x256xbf16>, vector<4x256xf32> -> vector<4x256xf32>
    %237 = arith.addf %234, %236 : vector<4x256xf32>
    %238 = vector.extract_strided_slice %214 {offsets = [0, 32], sizes = [4, 4], strides = [1, 1]} : vector<4x36xbf16> to vector<4x4xbf16>
    %cst_76 = arith.constant dense<0.000000e+00> : vector<4x256xf32>
    %239 = tpu.matmul %238, %213, %cst_76 {dimension_numbers = #tpu.dot_dimension_numbers<[1], [0], [0], [1], [0, 0, 1, 1], [], []>} : vector<4x4xbf16>, vector<4x256xbf16>, vector<4x256xf32> -> vector<4x256xf32>
    %240 = arith.addf %237, %239 : vector<4x256xf32>
    %241 = arith.addf %49, %240 : vector<4x256xf32>
    %242 = vector.shape_cast %241 : vector<4x256xf32> to vector<1x4x256xf32>
    %c0_77 = arith.constant 0 : index
    %c0_78 = arith.constant 0 : index
    %c0_79 = arith.constant 0 : index
    %243 = vector.load %arg8[%c0_77, %c0_78, %c0_79] : memref<1x4x256xf32, #tpu.memory_space<vmem>>, vector<1x4x256xf32>
    tpu.vector_store %arg8[%c0_77, %c0_78, %c0_79], %242 {strides = array<i32>} : memref<1x4x256xf32, #tpu.memory_space<vmem>>, vector<1x4x256xf32>,
    return
  }
  func.func @transform_0(%arg0: i32) -> (i32, i32, i32) {
    %c0_i32 = arith.constant 0 : i32
    %c0_i32_0 = arith.constant 0 : i32
    %c0_i32_1 = arith.constant 0 : i32
    return %arg0, %c0_i32, %c0_i32_0 : i32, i32, i32
  }
  func.func @transform_1(%arg0: i32) -> (i32, i32) {
    %c0_i32 = arith.constant 0 : i32
    %c0_i32_0 = arith.constant 0 : i32
    %c0_i32_1 = arith.constant 0 : i32
    return %c0_i32, %c0_i32_0 : i32, i32
  }
  func.func @transform_2(%arg0: i32) -> (i32, i32) {
    %c0_i32 = arith.constant 0 : i32
    %c0_i32_0 = arith.constant 0 : i32
    %c0_i32_1 = arith.constant 0 : i32
    return %c0_i32, %c0_i32_0 : i32, i32
  }
  func.func @transform_3(%arg0: i32) -> (i32, i32) {
    %c0_i32 = arith.constant 0 : i32
    %c0_i32_0 = arith.constant 0 : i32
    %c0_i32_1 = arith.constant 0 : i32
    return %c0_i32, %c0_i32_0 : i32, i32
  }
  func.func @transform_4(%arg0: i32) -> (i32, i32) {
    %c0_i32 = arith.constant 0 : i32
    %c0_i32_0 = arith.constant 0 : i32
    %c0_i32_1 = arith.constant 0 : i32
    return %c0_i32, %c0_i32_0 : i32, i32
  }
  func.func @transform_5(%arg0: i32) -> (i32, i32) {
    %c0_i32 = arith.constant 0 : i32
    %c0_i32_0 = arith.constant 0 : i32
    %c0_i32_1 = arith.constant 0 : i32
    return %c0_i32, %c0_i32_0 : i32, i32
  }
  func.func @transform_6(%arg0: i32) -> (i32, i32) {
    %c0_i32 = arith.constant 0 : i32
    %c0_i32_0 = arith.constant 0 : i32
    %c0_i32_1 = arith.constant 0 : i32
    return %c0_i32, %c0_i32_0 : i32, i32
  }
  func.func @transform_7(%arg0: i32) -> (i32, i32, i32) {
    %c0_i32 = arith.constant 0 : i32
    %c0_i32_0 = arith.constant 0 : i32
    %c0_i32_1 = arith.constant 0 : i32
    return %arg0, %c0_i32, %c0_i32_0 : i32, i32, i32
  }
}

</mosaic_0001>

<bundles_post_ra>
// kernel: tpu_custom_call.1
= control target key start
LH: loop header
LB: loop body
LE: loop exit
PB: predicated region body
PF: predicated region fallthrough
CT: control target
= control target key end

     0   :  { %12 = vsyncpa [#allocation3], 0  ;;  %s2413_s0 = inlined_call_operand.vmem [shape: f32[2,4,256], index: 0, kind: input, shape index: {}]   ;;  %s2414_s1 = inlined_call_operand.vmem [shape: f32[4,1], index: 1, kind: input, shape index: {}]   ;;  %s2415_s2 = inlined_call_operand.vmem [shape: f32[4,1], index: 2, kind: input, shape index: {}]   ;;  %s2416_s3 = inlined_call_operand.vmem [shape: bf16[4,36], index: 3, kind: input, shape index: {}]   ;;  %s2417_s4 = inlined_call_operand.vmem [shape: f32[4,1], index: 4, kind: input, shape index: {}]   ;;  %s2418_s5 = inlined_call_operand.vmem [shape: f32[4,1], index: 5, kind: input, shape index: {}]   ;;  %s2419_s6 = inlined_call_operand.vmem [shape: bf16[4,36], index: 6, kind: input, shape index: {}]   ;;  %s2420_s7 = inlined_call_operand.hbm [shape: f32[2,4,256], index: 7, kind: output, shape index: {}]  }
   0x1   :  { %14 = vsyncpa [#allocation3 + $0x1], 0  ;;  %s2004_s24 = smov 0   ;;  %s2006_s25 = smov 0  }
   0x2   :  { %s2008_s26 = smov 0   ;;  %s2010_s27 = smov 0  }
   0x3 LB: > { %s2025_s28 = sadd.s32 4294967295, %s1943_s27   ;;  %s1703_s29 = sadd.s32 4294967294, %s1943_s27   ;;  %s1943_s27 = sphi %s2010_s27, %s2437_s27   ;;  %s1939_s26 = sphi %s2008_s26, %s2436_s26   ;;  %s1935_s25 = sphi %s2006_s25, %s2435_s25   ;;  %s1931_s24 = sphi %s2004_s24, %s2434_s24  }
   0x4   : > { %s2029_s30 = sadd.s32 1, %s1943_s27   ;;  %s179_s8 = sadd.s32 1, %s1939_s26 }
   0x5   : > { %s176_s9 = ssub.s32 %s1943_s27, %s2029_s30  ;;  %p189_p0 = scmp.ne.s32.totalorder %s1939_s26, %s1935_s25 }
   0x6   : > { %p177_p1 = scmp.eq.s32.totalorder %s176_s9, 0  ;;  %p190_p2 = scmp.eq.s32.totalorder %s2025_s28, 1 }
   0x7   : > { %p195_p3 = scmp.ne.s32.totalorder %s1935_s25, %s1931_s24  ;;  %p196_p4 = scmp.eq.s32.totalorder %s1703_s29, 1 }
   0x8   : > { %s2040_s10 = scalar_select %p177_p1, %s1939_s26, %s179_s8  }
   0x9   : > { %p2042_p5 = por %p190_p2, %p189_p0  ;;  %p2046_p6 = por %p196_p4, %p195_p3 }
   0xa   : > { %p1706_p7 = scmp.ge.s32.totalorder %s1943_s27, 1  ;;  %p240_p8 = scmp.lt.s32.totalorder %s1943_s27, 3 }
   0xc   : > { %p241_p9 = pnand %p1706_p7, %p240_p8 }
   0xd   : > { %p272_p10 = scmp.lt.s32.totalorder (!%p241_p9), %s2025_s28, 1  ;;  %vm317_vm0 = vcmask (!%p241_p9), 1043456   ;;  %v312_v5 = vld [vmem:[%s2414_s1] sm:$0xf] (!%p241_p9)  ;;  %v1945_v6 = vmov (!%p241_p9), 0   ;;  %v281_v8 = vlaneseq (!%p241_p9)  ;;  %s1948_s29 = smov (!%p241_p9), 16  }
   0xe   : > { %244 = sbr.rel (%p241_p9) target bundleno = 1562 (0x61a), region = 48  ;;  %1874 = vset.pattern.permute.xlu1 (!%p241_p9), %v1945_v6  ;;  %574 = vmatprep.mubr.bf16.mxu0 (!%p241_p9), %v1945_v6  ;;  %v313_v7 = vld [vmem:[%s2415_s2] sm:$0xf] (!%p241_p9)  ;;  %v1946_v9 = vmov (!%p241_p9), 839922192   ;;  %s2426_s8 = smov (!%p241_p9), 120  }
   0xf   : > { %358 = vperm.xlu1 (!%p241_p9), %1874, %v312_v5   ;;  %1875 = vset.pattern.permute.xlu0 (!%p241_p9), %v1945_v6  ;;  %v326_v10 = vunpack.c.l.s4 (!%p241_p9), %v1946_v9  ;;  %v2070_v12 = vshrl.u32 (!%p241_p9), %v281_v8, 7  ;;  %v1947_v29 = vmov (!%p241_p9), 1983009808   ;;  %v2081_v40 = vld [vmem:[%s2416_s3] sm:$0x3] (!%p241_p9)  ;;  %s1950_s9 = smov (!%p241_p9), 124  }
  0x10   : > { %1187 = vmatprep.mubr.bf16.mxu1 (!%p241_p9), %v1945_v6  ;;  %v524_v30 = vunpack.c.l.s4 (!%p241_p9), %v1947_v29  ;;  %s1953_s15 = smov (!%p241_p9), 112   ;;  %s1954_s16 = smov (!%p241_p9), 127   ;;  %v282_v46 = vand.u32 (!%p241_p9), 127, %v281_v8  ;;  %vm426_vm2 = vcmask (!%p241_p9), 130048   ;;  %vm536_vm6 = vcmask (!%p241_p9), 1041408  }
  0x11   : > { %v327_v11 = vunpack.c.0.s8 (!%p241_p9), %v326_v10  ;;  %s1956_s18 = smov (!%p241_p9), 113   ;;  %s2421_s19 = smov (!%p241_p9), 104   ;;  %v412_v54 = vsub.s32 (!%p241_p9), 0, %v2070_v12  ;;  %vm532_vm7 = vcmask (!%p241_p9), 31744   ;;  %v416_v57 = vsub.s32 (!%p241_p9), 4, %v2070_v12 }
  0x12   : > { %v525_v36 = vunpack.c.0.s8 (!%p241_p9), %v524_v30  ;;  %s1958_s20 = smov (!%p241_p9), 116   ;;  %s2423_s21 = smov (!%p241_p9), 111   ;;  %v283_v47 = vadd.s32 (!%p241_p9), 128, %v282_v46  ;;  %v288_v48 = vand.u32 (!%p241_p9), 15, %v282_v46  ;;  %vm396_vm8 = vcmask (!%p241_p9), 138240  }
  0x13   : > { %371 = vperm.xlu1 (!%p241_p9), %1874, %v313_v7   ;;  %v330_v13 = vsub.s32 (!%p241_p9), %v327_v11, %v2070_v12  ;;  %s2422_s22 = smov (!%p241_p9), 96   ;;  %s1961_s23 = smov (!%p241_p9), 108   ;;  %vm435_vm14 = vcmask (!%p241_p9), 121856  }
  0x14   : > { %v2076_v39 = vsub.s32 (!%p241_p9), %v525_v36, %v2070_v12  ;;  %v295_v49 = vand.u32 (!%p241_p9), 15, %v283_v47  ;;  %vm308_vm3 = vcmp.ge.s32.totalorder (!%p241_p9), %v288_v48, 1  ;;  %vm310_vm9 = vcmp.le.s32.totalorder (!%p241_p9), %v288_v48, 14 }
  0x15   : > { %s273_s13 = scalar_select %p272_p10, %s2025_s28, 1 }
  0x16   : > { %v529_v44 = vrot.slane %v2081_v40, %v2076_v39  ;;  %vm309_vm4 = vcmp.ge.s32.totalorder %v295_v49, 1  ;;  %vm311_vm10 = vcmp.le.s32.totalorder %v295_v49, 14 }
  0x17   : > { %s1751_s14 = sshll.u32 %s273_s13, 3  ;;  %s1951_s13 = smov 1   ;;  %vm408_vm5 = vmpackc.low %vm309_vm4, %vm308_vm3  ;;  %vm464_vm3 = vcmask 7168   ;;  %vm477_vm4 = vcmask 1039360  }
  0x18   : > { %s276_s17 = scalar_lea.vmem %s2413_s0, %s1751_s14  ;;  %s1952_s14 = smov 17   ;;  %v409_v56 = vsel %vm408_vm5, 65537, %v1945_v6  ;;  %vm446_vm12 = vmpackc.low %vm311_vm10, %vm310_vm9  ;;  %vm490_vm5 = vcmask 924672   ;;  %vm503_vm9 = vcmask 916480   ;;  %vm512_vm10 = vcmask 908288  }
  0x19   : > { %v280_v0 = vld [vmem:[%s276_s17] sm:$0xff]  ;;  %s1955_s17 = smov 15   ;;  %v2143_v59 = vrot.slane %v409_v56, %v412_v54  ;;  %v2146_v60 = vrot.slane %v409_v56, %v416_v57 }
  0x1a   : > { %v315_v1 = vcombine.high %v280_v0, %v280_v0  ;;  %v318_v2 = vsel %vm317_vm0, %v280_v0, 0.0 }
  0x1b   : > { %vm418_vm11 = vcmp.ne.s16.totalorder %v2143_v59, 0  ;;  %vm419_vm13 = vcmp.ne.s16.totalorder %v2146_v60, 0 }
  0x1c   : > { %v319_v3 = vsel %vm317_vm0, %v315_v1, 0.0  ;;  %v447_v1 = vsel %vm446_vm12, 65537, %v1945_v6 }
  0x1d   : > { %v320_v4 = vadd.f32 %v319_v3, %v318_v2  ;;  %v2156_v3 = vrot.slane %v447_v1, %v412_v54  ;;  %v2162_v8 = vrot.slane %v447_v1, %v416_v57 }
  0x1f   : > { %321 = vadd.xlane.f32.xlu0 %v320_v4  ;;  %vm456_vm15 = vcmp.ne.s16.totalorder %v2156_v3, 0 }
  0x8e   : > { %v359_v26 = vpop.permute.xlu1 %358 }
  0x8f   : > { %v366_v33 = vrot.slane %v359_v26, %v330_v13 }
  0x92   : > { %v372_v31 = vpop.permute.xlu1 %371 }
  0x93   : > { %v379_v35 = vrot.slane %v372_v31, %v330_v13 }
  0xac   : > { %v322_v14 = vpop.xlane.xlu0 %321 }
  0xad   : > { %v323_v15 = vmul.f32 0.00390625, %v322_v14 }
  0xaf   : > { %v331_v16 = vrot.slane %v323_v15, %v330_v13 }
  0xb1   : > { %v333_v17 = vsub.f32 %v280_v0, %v331_v16 }
  0xb3   : > { %v334_v18 = vmul.f32 %v333_v17, %v333_v17 }
  0xb5   : > { %v336_v19 = vcombine.high %v334_v18, %v334_v18  ;;  %v338_v20 = vsel %vm317_vm0, %v334_v18, 0.0 }
  0xb7   : > { %v339_v21 = vsel %vm317_vm0, %v336_v19, 0.0 }
  0xb8   : > { %v340_v22 = vadd.f32 %v339_v21, %v338_v20 }
  0xba   : > { %341 = vadd.xlane.f32.xlu0 %v340_v22 }
 0x147   : > { %v342_v23 = vpop.xlane.xlu0 %341 }
 0x148   : > { %v343_v24 = vmul.f32 0.00390625, %v342_v23 }
 0x14a   : > { %v344_v25 = vadd.f32 1e-05, %v343_v24 }
 0x14c   : > { %1877 = vrsqrt.f32 %v344_v25 }
 0x156   : > { %v1878_v27 = vpop.eup %1877 }
 0x157   : > { %v353_v28 = vrot.slane %v1878_v27, %v330_v13 }
 0x159   : > { %v355_v32 = vmul.f32 %v353_v28, %v333_v17 }
 0x15b   : > { %v368_v34 = vmul.f32 %v366_v33, %v355_v32 }
 0x15d   : > { %v381_v37 = vadd.f32 %v379_v35, %v368_v34 }
 0x15f   : > { %vm382_vm1 = vcmp.ge.f32.partialorder %v381_v37, 0.0  ;;  %v383_v38 = vmul.f32 0.2, %v381_v37 }
 0x161   : > { %v2083_v41 = vsel %vm382_vm1, %v381_v37, %v383_v38  ;;  %vm457_vm1 = vcmp.ne.s16.totalorder %v2162_v8, 0 }
 0x162   : > { %v386_v42 = vcombine.high %v2083_v41, %v2083_v41  ;;  %v2089_v43 = vpack.c.bf16 %v2083_v41, %v2083_v41 }
 0x164   : > { %v2093_v45 = vpack.c.bf16 %v386_v42, %v386_v42  ;;  %422 = vrot.lane.b32.xlu0 %v2089_v43, %s1948_s29  ;;  %v747_v28 = vsel %vm536_vm6, %v2089_v43, 0 }
 0x166   : > { %424 = vrot.lane.b32.xlu1 %v2093_v45, %s1948_s29 }
 0x168   : > { %633 = vrot.lane.b32.xlu0 %v529_v44, %s2426_s8 }
 0x16a   : > { %530 = vrot.lane.b32.xlu1 %v529_v44, %s1950_s9 }
 0x16c   : > { %462 = vrot.lane.b32.xlu0 %v2093_v45, %s1951_s13 }
 0x16e   : > { %392 = vrot.lane.b32.xlu1 %v2089_v43, %s1952_s14 }
 0x170   : > { %741 = vrot.lane.b32.xlu0 %v529_v44, %s1953_s15 }
 0x172   : > { %394 = vrot.lane.b32.xlu1 %v2093_v45, %s1952_s14 }
 0x174   : > { %475 = vrot.lane.b32.xlu0 %v2093_v45, %s1954_s16 }
 0x176   : > { %431 = vrot.lane.b32.xlu1 %v2089_v43, %s1955_s17 }
 0x178   : > { %486 = vrot.lane.b32.xlu0 %v2089_v43, %s1956_s18 }
 0x17a   : > { %433 = vrot.lane.b32.xlu1 %v2093_v45, %s1955_s17 }
 0x17c   : > { %849 = vrot.lane.b32.xlu0 %v529_v44, %s2421_s19  ;;  %s2425_s19 = smov 100  }
 0x17e   : > { %460 = vrot.lane.b32.xlu1 %v2089_v43, %s1951_s13 }
 0x180   : > { %501 = vrot.lane.b32.xlu0 %v2093_v45, %s1953_s15 }
 0x182   : > { %687 = vrot.lane.b32.xlu1 %v529_v44, %s1958_s20 }
 0x184   : > { %508 = vrot.lane.b32.xlu0 %v2089_v43, %s2423_s21 }
 0x186   : > { %473 = vrot.lane.b32.xlu1 %v2089_v43, %s1954_s16 }
 0x188   : > { %956 = vrot.lane.b32.xlu0 %v529_v44, %s2422_s22 }
 0x18a   : > { %795 = vrot.lane.b32.xlu1 %v529_v44, %s1961_s23 }
 0x18e   : > { %488 = vrot.lane.b32.xlu1 %v2093_v45, %s1956_s18 }
 0x192   : > { %499 = vrot.lane.b32.xlu1 %v2089_v43, %s1953_s15 }
 0x196   : > { %903 = vrot.lane.b32.xlu1 %v529_v44, %s2425_s19 }
 0x19a   : > { %510 = vrot.lane.b32.xlu1 %v2093_v45, %s2423_s21 }
 0x1d6   : > { %v423_v50 = vpop.permute.xlu0 %422 }
 0x1d7   : > { %v430_v51 = vsel %vm426_vm2, 0, %v423_v50 }
 0x1d8   : > { %v425_v52 = vpop.permute.xlu1 %424  ;;  %v537_v55 = vsel %vm536_vm6, %v430_v51, 0 }
 0x1d9   : > { %v427_v53 = vsel %vm426_vm2, %v423_v50, %v425_v52 }
 0x1da   : > { %1710 = vmatprep.subr.msk.bf16.mxu0 %vm536_vm6, %v427_v53  ;;  %v634_v10 = vpop.permute.xlu0 %633 }
 0x1db   : > { %543 = vmatpush1.bf16.msra.mxu0 %v537_v55 }
 0x1dc   : > { %v531_v58 = vpop.permute.xlu1 %530 }
 0x1de   : > { %1711 = vmatmul.mubr.msk.bf16.vlgmr.msra.gmra.mrb[0].mxu0 %vm532_vm7, %v531_v58  ;;  %v463_v16 = vpop.permute.xlu0 %462 }
 0x1df   : > { %624 = vmatprep.mubr.bf16.mxu0 %v1945_v6 }
 0x1e0   : > { %v393_v61 = vpop.permute.xlu1 %392 }
 0x1e1   : > { %v402_v62 = vsel %vm396_vm8, 0, %v393_v61 }
 0x1e2   : > { %v420_v63 = vsel %vm418_vm11, %v402_v62, 0  ;;  %v742_v23 = vpop.permute.xlu0 %741 }
 0x1e3   : > { %v587_v5 = vsel %vm536_vm6, %v420_v63, 0 }
 0x1e4   : > { %v395_v0 = vpop.permute.xlu1 %394 }
 0x1e5   : > { %v397_v2 = vsel %vm396_vm8, %v393_v61, %v395_v0 }
 0x1e6   : > { %v421_v4 = vsel %vm419_vm13, %v397_v2, 0  ;;  %v476_v25 = vpop.permute.xlu0 %475 }
 0x1e7   : > { %1712 = vmatprep.subr.msk.bf16.mxu0 %vm536_vm6, %v421_v4  ;;  %v482_v27 = vsel %vm477_vm4, %v476_v25, 0  ;;  %v1011_v4 = vld [vmem:[%s2418_s5] sm:$0xf] }
 0x1e8   : > { %593 = vmatpush1.bf16.msra.mxu0 %v587_v5  ;;  %v432_v7 = vpop.permute.xlu1 %431  ;;  %v485_v29 = vsel %vm457_vm1, %v482_v27, 0 }
 0x1e9   : > { %v440_v9 = vsel %vm435_vm14, 0, %v432_v7 }
 0x1ea   : > { %v458_v11 = vsel %vm456_vm15, %v440_v9, 0  ;;  %v487_v34 = vpop.permute.xlu0 %486 }
 0x1eb   : > { %1713 = vmatmul.mubr.msk.bf16.vlgmr.msra.gmra.mrb[0].mxu0 %vm532_vm7, %v2081_v40  ;;  %v639_v15 = vsel %vm536_vm6, %v458_v11, 0 }
 0x1ec   : > { %v434_v12 = vpop.permute.xlu1 %433  ;;  %676 = vmatprep.mubr.bf16.mxu0 %v1945_v6 }
 0x1ed   : > { %v436_v13 = vsel %vm435_vm14, %v432_v7, %v434_v12 }
 0x1ee   : > { %v459_v14 = vsel %vm457_vm1, %v436_v13, 0  ;;  %v850_v38 = vpop.permute.xlu0 %849 }
 0x1ef   : > { %1714 = vmatprep.subr.msk.bf16.mxu0 %vm536_vm6, %v459_v14 }
 0x1f0   : > { %645 = vmatpush1.bf16.msra.mxu0 %v639_v15  ;;  %v461_v17 = vpop.permute.xlu1 %460 }
 0x1f1   : > { %v465_v18 = vsel %vm464_vm3, %v461_v17, %v463_v16  ;;  %v469_v19 = vsel %vm464_vm3, 0, %v461_v17  ;;  %v1010_v16 = vld [vmem:[%s2417_s4] sm:$0xf] }
 0x1f2   : > { %v472_v20 = vsel %vm419_vm13, %v465_v18, 0  ;;  %v471_v21 = vsel %vm418_vm11, %v469_v19, 0  ;;  %v502_v44 = vpop.permute.xlu0 %501 }
 0x1f3   : > { %1716 = vmatprep.subr.msk.bf16.mxu0 %vm536_vm6, %v472_v20  ;;  %v693_v22 = vsel %vm536_vm6, %v471_v21, 0  ;;  %v507_v46 = vsel %vm503_vm9, %v502_v44, 0 }
 0x1f4   : > { %v688_v24 = vpop.permute.xlu1 %687 }
 0x1f6   : > { %v509_v53 = vpop.permute.xlu0 %508 }
 0x1f7   : > { %1715 = vmatmul.mubr.msk.bf16.vlgmr.msra.gmra.mrb[0].mxu0 %vm532_vm7, %v634_v10 }
 0x1f8   : > { %699 = vmatpush1.bf16.msra.mxu0 %v693_v22  ;;  %730 = vmatprep.mubr.bf16.mxu0 %v1945_v6  ;;  %v474_v26 = vpop.permute.xlu1 %473 }
 0x1f9   : > { %1718 = vmatprep.subr.msk.bf16.mxu0 %vm536_vm6, %v2093_v45  ;;  %v478_v31 = vsel %vm477_vm4, %v474_v26, %v476_v25 }
 0x1fa   : > { %v484_v33 = vsel %vm456_vm15, %v478_v31, 0  ;;  %v957_v57 = vpop.permute.xlu0 %956 }
 0x1fb   : > { %v801_v36 = vsel %vm536_vm6, %v484_v33, 0 }
 0x1fc   : > { %v796_v30 = vpop.permute.xlu1 %795 }
 0x200   : > { %v489_v32 = vpop.permute.xlu1 %488 }
 0x201   : > { %v495_v35 = vsel %vm490_vm5, %v489_v32, 0  ;;  %v491_v40 = vsel %vm490_vm5, %v487_v34, %v489_v32 }
 0x202   : > { %v498_v37 = vsel %vm419_vm13, %v495_v35, 0  ;;  %v497_v43 = vsel %vm418_vm11, %v491_v40, 0  ;;  %v1136_v35 = vld [vmem:[%s2419_s6] sm:$0x3] }
 0x203   : > { %1717 = vmatmul.mubr.msk.bf16.vlgmr.msra.gmra.mrb[0].mxu0 %vm532_vm7, %v688_v24  ;;  %v855_v45 = vsel %vm536_vm6, %v497_v43, 0 }
 0x204   : > { %753 = vmatpush1.bf16.msra.mxu0 %v747_v28  ;;  %784 = vmatprep.mubr.bf16.mxu0 %v1945_v6  ;;  %v500_v42 = vpop.permute.xlu1 %499 }
 0x205   : > { %1720 = vmatprep.subr.msk.bf16.mxu0 %vm536_vm6, %v485_v29  ;;  %v504_v49 = vsel %vm503_vm9, %v500_v42, %v502_v44 }
 0x206   : > { %v909_v51 = vsel %vm536_vm6, %v504_v49, 0 }
 0x208   : > { %v904_v47 = vpop.permute.xlu1 %903 }
 0x20c   : > { %v511_v48 = vpop.permute.xlu1 %510 }
 0x20d   : > { %v517_v50 = vsel %vm512_vm10, %v511_v48, 0  ;;  %v513_v54 = vsel %vm512_vm10, %v509_v53, %v511_v48 }
 0x20e   : > { %v520_v52 = vsel %vm457_vm1, %v517_v50, 0  ;;  %v519_v55 = vsel %vm456_vm15, %v513_v54, 0 }
 0x20f   : > { %1719 = vmatmul.mubr.msk.bf16.vlgmr.msra.gmra.mrb[0].mxu0 %vm532_vm7, %v742_v23  ;;  %v962_v56 = vsel %vm536_vm6, %v519_v55, 0 }
 0x210   : > { %807 = vmatpush1.bf16.msra.mxu0 %v801_v36  ;;  %838 = vmatprep.mubr.bf16.mxu0 %v1945_v6  ;;  %v1144_v36 = vrot.slane %v1136_v35, %v2076_v39 }
 0x211   : > { %1722 = vmatprep.subr.msk.bf16.mxu0 %vm536_vm6, %v498_v37 }
 0x21b   : > { %1721 = vmatmul.mubr.msk.bf16.vlgmr.msra.gmra.mrb[0].mxu0 %vm532_vm7, %v796_v30 }
 0x21c   : > { %861 = vmatpush1.bf16.msra.mxu0 %v855_v45  ;;  %892 = vmatprep.mubr.bf16.mxu0 %v1945_v6 }
 0x21d   : > { %1724 = vmatprep.subr.msk.bf16.mxu0 %vm536_vm6, %v507_v46 }
 0x227   : > { %1723 = vmatmul.mubr.msk.bf16.vlgmr.msra.gmra.mrb[0].mxu0 %vm532_vm7, %v850_v38 }
 0x228   : > { %914 = vmatpush1.bf16.msra.mxu0 %v909_v51  ;;  %945 = vmatprep.mubr.bf16.mxu0 %v1945_v6 }
 0x229   : > { %1726 = vmatprep.subr.msk.bf16.mxu0 %vm536_vm6, %v520_v52 }
 0x233   : > { %1725 = vmatmul.mubr.msk.bf16.vlgmr.msra.gmra.mrb[0].mxu0 %vm532_vm7, %v904_v47 }
 0x234   : > { %968 = vmatpush1.bf16.msra.mxu0 %v962_v56  ;;  %999 = vmatprep.mubr.bf16.mxu0 %v1945_v6 }
 0x23f   : > { %1727 = vmatmul.mubr.msk.bf16.vlgmr.msra.gmra.mrb[0].mxu0 %vm532_vm7, %v957_v57 }
 0x312   : > { %v1001_v58 = vpop.f32.mrb[0].mxu0 }
 0x313   : > { %v1012_v61 = vsel %vm317_vm0, %v1001_v58, 0.0  ;;  %v1003_v62 = vpop.f32.mrb[1].mxu0 }
 0x314   : > { %v1013_v63 = vsel %vm317_vm0, %v1003_v62, 0.0  ;;  %v1005_v0 = vpop.f32.mrb[2].mxu0 }
 0x315   : > { %v1006_v1 = vpop.f32.mrb[3].mxu0  ;;  %v1014_v2 = vadd.f32 %v1013_v63, %v1012_v61 }
 0x317   : > { %1015 = vadd.xlane.f32.xlu1 %v1014_v2 }
 0x328   : > { %1041 = vperm.xlu1 %1874, %v1011_v4  }
 0x3a4   : > { %v1016_v5 = vpop.xlane.xlu1 %1015 }
 0x3a5   : > { %v1017_v7 = vmul.f32 0.00390625, %v1016_v5 }
 0x3a7   : > { %v1018_v9 = vsub.f32 %v1001_v58, %v1017_v7  ;;  %v1019_v10 = vsub.f32 %v1003_v62, %v1017_v7 }
 0x3a8   : > { %v1042_v26 = vpop.permute.xlu1 %1041 }
 0x3a9   : > { %v1020_v11 = vmul.f32 %v1018_v9, %v1018_v9  ;;  %v1021_v12 = vmul.f32 %v1019_v10, %v1019_v10 }
 0x3ab   : > { %v1022_v13 = vsel %vm317_vm0, %v1020_v11, 0.0  ;;  %v1023_v14 = vsel %vm317_vm0, %v1021_v12, 0.0 }
 0x3ac   : > { %v1024_v15 = vadd.f32 %v1023_v14, %v1022_v13 }
 0x3ae   : > { %1025 = vadd.xlane.f32.xlu0 %v1024_v15 }
 0x3c4   : > { %1034 = vperm.xlu0 %1875, %v1010_v16  }
 0x43b   : > { %v1026_v17 = vpop.xlane.xlu0 %1025 }
 0x43c   : > { %v1027_v18 = vmul.f32 0.00390625, %v1026_v17 }
 0x43e   : > { %v1028_v19 = vadd.f32 1e-05, %v1027_v18 }
 0x440   : > { %1879 = vrsqrt.f32 %v1028_v19 }
 0x443   : > { %v1035_v21 = vpop.permute.xlu0 %1034 }
 0x44a   : > { %v1880_v20 = vpop.eup %1879 }
 0x44b   : > { %v1030_v22 = vmul.f32 %v1880_v20, %v1018_v9  ;;  %v1031_v23 = vmul.f32 %v1880_v20, %v1019_v10 }
 0x44d   : > { %v1037_v24 = vmul.f32 %v1035_v21, %v1030_v22  ;;  %v1038_v25 = vmul.f32 %v1035_v21, %v1031_v23 }
 0x44f   : > { %v1044_v27 = vadd.f32 %v1042_v26, %v1037_v24  ;;  %v1045_v28 = vadd.f32 %v1042_v26, %v1038_v25 }
 0x451   : > { %vm1046_vm0 = vcmp.ge.f32.partialorder %v1044_v27, 0.0  ;;  %vm1047_vm12 = vcmp.ge.f32.partialorder %v1045_v28, 0.0  ;;  %v1048_v29 = vmul.f32 0.2, %v1044_v27  ;;  %v1049_v30 = vmul.f32 0.2, %v1045_v28 }
 0x453   : > { %v1050_v31 = vsel %vm1046_vm0, %v1044_v27, %v1048_v29  ;;  %v1051_v32 = vsel %vm1047_vm12, %v1045_v28, %v1049_v30 }
 0x454   : > { %v2240_v33 = vpack.c.bf16 %v1050_v31, %v1050_v31  ;;  %v2242_v34 = vpack.c.bf16 %v1051_v32, %v1051_v32 }
 0x456   : > { %1076 = vrot.lane.b32.xlu0 %v2242_v34, %s1955_s17  ;;  %1067 = vrot.lane.b32.xlu1 %v2240_v33, %s1948_s29  ;;  %v1360_v12 = vsel %vm536_vm6, %v2240_v33, 0 }
 0x45a   : > { %1085 = vrot.lane.b32.xlu0 %v2240_v33, %s1951_s13  ;;  %1069 = vrot.lane.b32.xlu1 %v2242_v34, %s1948_s29  ;;  %s2429_s29 = smov 120  }
 0x45e   : > { %1300 = vrot.lane.b32.xlu0 %v1144_v36, %s1958_s20  ;;  %1145 = vrot.lane.b32.xlu1 %v1144_v36, %s1950_s9  ;;  %s2430_s9 = smov 100   ;;  %s2431_s20 = smov 111  }
 0x462   : > { %1096 = vrot.lane.b32.xlu0 %v2240_v33, %s1954_s16  ;;  %1056 = vrot.lane.b32.xlu1 %v2240_v33, %s1952_s14 }
 0x466   : > { %1408 = vrot.lane.b32.xlu0 %v1144_v36, %s1961_s23  ;;  %1058 = vrot.lane.b32.xlu1 %v2242_v34, %s1952_s14  ;;  %s2432_s14 = smov 104  }
 0x46a   : > { %1109 = vrot.lane.b32.xlu0 %v2242_v34, %s1956_s18  ;;  %1074 = vrot.lane.b32.xlu1 %v2240_v33, %s1955_s17  ;;  %s1752_s17 = sshll.u32 %s2025_s28, 7 }
 0x46b   : > { %s2371_s8 = scalar_lea.hbm %s2420_s7, %s1752_s17 }
 0x46e   : > { %1118 = vrot.lane.b32.xlu0 %v2240_v33, %s1953_s15  ;;  %1246 = vrot.lane.b32.xlu1 %v1144_v36, %s2429_s29  ;;  %s1963_s29 = smov [#allocation2]  }
 0x472   : > { %1516 = vrot.lane.b32.xlu0 %v1144_v36, %s2430_s9  ;;  %1087 = vrot.lane.b32.xlu1 %v2242_v34, %s1951_s13  ;;  %s2433_s13 = smov 96   ;;  %s1885_s9 = sshll.u32 %s1963_s29, 4  ;;  %s1886_s9 = int_to_ptr.vmem [resolvable:$false] %s1885_s9 }
 0x476   : > { %1127 = vrot.lane.b32.xlu0 %v2242_v34, %s2431_s20  ;;  %1354 = vrot.lane.b32.xlu1 %v1144_v36, %s1953_s15 }
 0x47a   : > { %1098 = vrot.lane.b32.xlu1 %v2242_v34, %s1954_s16 }
 0x47e   : > { %1107 = vrot.lane.b32.xlu1 %v2240_v33, %s1956_s18 }
 0x482   : > { %1462 = vrot.lane.b32.xlu1 %v1144_v36, %s2432_s14 }
 0x486   : > { %1120 = vrot.lane.b32.xlu1 %v2242_v34, %s1953_s15  ;;  %s269_s15 = sand.u32 1, %s1935_s25  }
 0x487   : > { %s1707_s16 = sshll.u32 %s269_s15, 3  ;;  %s1630_s19 = scalar_lea.sflag [#allocation3], %s269_s15 }
 0x488   : > { %s271_s18 = scalar_lea.vmem [#allocation2], %s1707_s16 }
 0x489   : > { %s1644_s21 = sshll.u32 %s271_s18, 4  ;;  %s2373_s21 = int_to_ptr.vmem [resolvable:$true] %s1644_s21 }
 0x48a   : > { %1125 = vrot.lane.b32.xlu1 %v2240_v33, %s2431_s20  ;;  %s1881_s28 = scalar_lea.vmem %s2373_s21, 128  ;;  %s1887_s20 = scalar_lea.vmem %s1886_s9, 256 }
 0x48b   : > { %p1882_p11 = scmp.ne.s32.totalorder %s2373_s21, %s1881_s28  ;;  %p1888_p0 = scmp.lt.s32.totalorder %s2373_s21, %s1886_s9 }
 0x48c   : > { %p1889_p1 = scmp.lt.s32.totalorder %s1887_s20, %s1881_s28 }
 0x48d   : > { %p1883_p12 = pnand %p1882_p11, %p2042_p5 }
 0x48e   : > { %1569 = vrot.lane.b32.xlu1 %v1144_v36, %s2433_s13  ;;  %p1890_p2 = por %p1889_p1, %p1888_p0 }
 0x48f   : > { %p1884_p13 = pneg %p1883_p12 }
 0x491   : > { %p1891_p3 = pnand %p1890_p2, %p1884_p13 }
 0x4c8   : > { %v1068_v39 = vpop.permute.xlu1 %1067  ;;  %v1077_v51 = vpop.permute.xlu0 %1076 }
 0x4c9   : > { %v1073_v37 = vsel %vm426_vm2, 0, %v1068_v39 }
 0x4ca   : > { %v1150_v42 = vsel %vm536_vm6, %v1073_v37, 0 }
 0x4cc   : > { %v1070_v38 = vpop.permute.xlu1 %1069  ;;  %v1086_v61 = vpop.permute.xlu0 %1085 }
 0x4cd   : > { %v1071_v40 = vsel %vm426_vm2, %v1068_v39, %v1070_v38  ;;  %v1092_v63 = vsel %vm464_vm3, 0, %v1086_v61 }
 0x4ce   : > { %1728 = vmatprep.subr.msk.bf16.mxu1 %vm536_vm6, %v1071_v40  ;;  %v1094_v2 = vsel %vm418_vm11, %v1092_v63, 0 }
 0x4cf   : > { %1156 = vmatpush1.bf16.msra.mxu1 %v1150_v42  ;;  %v1306_v4 = vsel %vm536_vm6, %v1094_v2, 0 }
 0x4d0   : > { %v1146_v43 = vpop.permute.xlu1 %1145  ;;  %v1301_v5 = vpop.permute.xlu0 %1300 }
 0x4d2   : > { %1729 = vmatmul.mubr.msk.bf16.vlgmr.msra.gmra.mrb[0].mxu1 %vm532_vm7, %v1146_v43 }
 0x4d3   : > { %1237 = vmatprep.mubr.bf16.mxu1 %v1945_v6 }
 0x4d4   : > { %v1057_v44 = vpop.permute.xlu1 %1056  ;;  %v1097_v9 = vpop.permute.xlu0 %1096 }
 0x4d5   : > { %v1063_v45 = vsel %vm396_vm8, 0, %v1057_v44 }
 0x4d6   : > { %v1065_v46 = vsel %vm418_vm11, %v1063_v45, 0 }
 0x4d7   : > { %v1200_v50 = vsel %vm536_vm6, %v1065_v46, 0 }
 0x4d8   : > { %v1059_v47 = vpop.permute.xlu1 %1058  ;;  %v1409_v13 = vpop.permute.xlu0 %1408 }
 0x4d9   : > { %v1060_v48 = vsel %vm396_vm8, %v1057_v44, %v1059_v47 }
 0x4da   : > { %v1066_v49 = vsel %vm419_vm13, %v1060_v48, 0 }
 0x4db   : > { %1730 = vmatprep.subr.msk.bf16.mxu1 %vm536_vm6, %v1066_v49 }
 0x4dc   : > { %1206 = vmatpush1.bf16.msra.mxu1 %v1200_v50  ;;  %v1075_v52 = vpop.permute.xlu1 %1074  ;;  %v1110_v16 = vpop.permute.xlu0 %1109 }
 0x4dd   : > { %v1078_v53 = vsel %vm435_vm14, %v1075_v52, %v1077_v51  ;;  %v1081_v54 = vsel %vm435_vm14, 0, %v1075_v52  ;;  %v1114_v18 = vsel %vm490_vm5, %v1110_v16, 0 }
 0x4de   : > { %v1083_v55 = vsel %vm456_vm15, %v1081_v54, 0  ;;  %v1084_v56 = vsel %vm457_vm1, %v1078_v53, 0  ;;  %v1117_v21 = vsel %vm419_vm13, %v1114_v18, 0 }
 0x4df   : > { %1731 = vmatmul.mubr.msk.bf16.vlgmr.msra.gmra.mrb[0].mxu1 %vm532_vm7, %v1136_v35  ;;  %1732 = vmatprep.subr.msk.bf16.mxu1 %vm536_vm6, %v1084_v56  ;;  %v1252_v57 = vsel %vm536_vm6, %v1083_v55, 0 }
 0x4e0   : > { %1258 = vmatpush1.bf16.msra.mxu1 %v1252_v57  ;;  %v1247_v58 = vpop.permute.xlu1 %1246  ;;  %1289 = vmatprep.mubr.bf16.mxu1 %v1945_v6  ;;  %v1119_v24 = vpop.permute.xlu0 %1118 }
 0x4e4   : > { %v1088_v62 = vpop.permute.xlu1 %1087  ;;  %v1517_v28 = vpop.permute.xlu0 %1516 }
 0x4e5   : > { %v1089_v0 = vsel %vm464_vm3, %v1086_v61, %v1088_v62 }
 0x4e6   : > { %v1095_v1 = vsel %vm419_vm13, %v1089_v0, 0 }
 0x4e7   : > { %1734 = vmatprep.subr.msk.bf16.mxu1 %vm536_vm6, %v1095_v1 }
 0x4e8   : > { %v1355_v7 = vpop.permute.xlu1 %1354  ;;  %v1128_v29 = vpop.permute.xlu0 %1127 }
 0x4e9   : > { %v1132_v31 = vsel %vm512_vm10, %v1128_v29, 0 }
 0x4ea   : > { %v1135_v32 = vsel %vm457_vm1, %v1132_v31, 0 }
 0x4eb   : > { %1733 = vmatmul.mubr.msk.bf16.vlgmr.msra.gmra.mrb[0].mxu1 %vm532_vm7, %v1247_v58 }
 0x4ec   : > { %1312 = vmatpush1.bf16.msra.mxu1 %v1306_v4  ;;  %1343 = vmatprep.mubr.bf16.mxu1 %v1945_v6  ;;  %v1099_v10 = vpop.permute.xlu1 %1098 }
 0x4ed   : > { %1736 = vmatprep.subr.msk.bf16.mxu1 %vm536_vm6, %v2242_v34  ;;  %v1103_v11 = vsel %vm477_vm4, %v1099_v10, 0  ;;  %v1100_v15 = vsel %vm477_vm4, %v1097_v9, %v1099_v10 }
 0x4ee   : > { %v1106_v14 = vsel %vm457_vm1, %v1103_v11, 0  ;;  %v1105_v17 = vsel %vm456_vm15, %v1100_v15, 0 }
 0x4ef   : > { %v1414_v20 = vsel %vm536_vm6, %v1105_v17, 0 }
 0x4f0   : > { %v1108_v19 = vpop.permute.xlu1 %1107 }
 0x4f1   : > { %v1111_v23 = vsel %vm490_vm5, %v1108_v19, %v1110_v16 }
 0x4f2   : > { %v1116_v25 = vsel %vm418_vm11, %v1111_v23, 0 }
 0x4f3   : > { %v1468_v27 = vsel %vm536_vm6, %v1116_v25, 0 }
 0x4f4   : > { %v1463_v22 = vpop.permute.xlu1 %1462 }
 0x4f7   : > { %1735 = vmatmul.mubr.msk.bf16.vlgmr.msra.gmra.mrb[0].mxu1 %vm532_vm7, %v1301_v5 }
 0x4f8   : > { %1366 = vmatpush1.bf16.msra.mxu1 %v1360_v12  ;;  %1397 = vmatprep.mubr.bf16.mxu1 %v1945_v6  ;;  %v1121_v26 = vpop.permute.xlu1 %1120 }
 0x4f9   : > { %1738 = vmatprep.subr.msk.bf16.mxu1 %vm536_vm6, %v1106_v14  ;;  %v1124_v60 = vsel %vm503_vm9, %v1121_v26, 0  ;;  %v1122_v30 = vsel %vm503_vm9, %v1119_v24, %v1121_v26 }
 0x4fa   : > { %v1522_v59 = vsel %vm536_vm6, %v1122_v30, 0 }
 0x4fc   : > { %v1126_v33 = vpop.permute.xlu1 %1125 }
 0x4fd   : > { %v1129_v34 = vsel %vm512_vm10, %v1126_v33, %v1128_v29 }
 0x4fe   : > { %v1134_v35 = vsel %vm456_vm15, %v1129_v34, 0 }
 0x4ff   : > { %v1575_v36 = vsel %vm536_vm6, %v1134_v35, 0 }
 0x500   : > { %v1570_v8 = vpop.permute.xlu1 %1569 }
 0x503   : > { %1737 = vmatmul.mubr.msk.bf16.vlgmr.msra.gmra.mrb[0].mxu1 %vm532_vm7, %v1355_v7 }
 0x504   : > { %1420 = vmatpush1.bf16.msra.mxu1 %v1414_v20  ;;  %1451 = vmatprep.mubr.bf16.mxu1 %v1945_v6 }
 0x505   : > { %1740 = vmatprep.subr.msk.bf16.mxu1 %vm536_vm6, %v1117_v21 }
 0x50f   : > { %1739 = vmatmul.mubr.msk.bf16.vlgmr.msra.gmra.mrb[0].mxu1 %vm532_vm7, %v1409_v13 }
 0x510   : > { %1474 = vmatpush1.bf16.msra.mxu1 %v1468_v27  ;;  %1505 = vmatprep.mubr.bf16.mxu1 %v1945_v6 }
 0x511   : > { %1742 = vmatprep.subr.msk.bf16.mxu1 %vm536_vm6, %v1124_v60 }
 0x51b   : > { %1741 = vmatmul.mubr.msk.bf16.vlgmr.msra.gmra.mrb[0].mxu1 %vm532_vm7, %v1463_v22 }
 0x51c   : > { %1527 = vmatpush1.bf16.msra.mxu1 %v1522_v59  ;;  %1558 = vmatprep.mubr.bf16.mxu1 %v1945_v6 }
 0x51d   : > { %1744 = vmatprep.subr.msk.bf16.mxu1 %vm536_vm6, %v1135_v32 }
 0x527   : > { %1743 = vmatmul.mubr.msk.bf16.vlgmr.msra.gmra.mrb[0].mxu1 %vm532_vm7, %v1517_v28 }
 0x528   : > { %1581 = vmatpush1.bf16.msra.mxu1 %v1575_v36  ;;  %1612 = vmatprep.mubr.bf16.mxu1 %v1945_v6 }
 0x533   : > { %1745 = vmatmul.mubr.msk.bf16.vlgmr.msra.gmra.mrb[0].mxu1 %vm532_vm7, %v1570_v8 }
 0x606   : > { %v1614_v39 = vpop.f32.mrb[0].mxu1 }
 0x607   : > { %v1616_v37 = vpop.f32.mrb[1].mxu1 }
 0x608   : > { %v1625_v3 = vcombine.low %v1614_v39, %v1616_v37  ;;  %v1618_v38 = vpop.f32.mrb[2].mxu1 }
 0x609   : > { %v1619_v40 = vpop.f32.mrb[3].mxu1 }
 0x60a   : > { %v1627_v42 = vadd.f32 %v1625_v3, %v2083_v41 }
 0x60c   : > { %1628 = vst [vmem:[%s271_s18] sm:$0xff] %v1627_v42 }
 0x60d   : > { %1894 = shalt.err (!%p1891_p3)
}
 0x60e   : > { %s1895_s14 = scalar_lea.hbm %s2371_s8, 128  ;;  %s1899_s16 = scalar_lea.hbm %s2420_s7, 256 }
 0x60f   : > { %p1896_p4 = scmp.ne.s32.totalorder %s2371_s8, %s1895_s14  ;;  %p1900_p9 = scmp.lt.u32.totalorder %s2371_s8, %s2420_s7 }
 0x610   : > { %p1901_p10 = scmp.lt.u32.totalorder %s1899_s16, %s1895_s14  ;;  %p1903_p12 = scmp.lt.u32.totalorder %s1895_s14, %s2371_s8 }
 0x611   : > { %p1897_p7 = pnand %p1896_p4, %p2042_p5 }
 0x612   : > { %p1902_p11 = por %p1901_p10, %p1900_p9 }
 0x613   : > { %p1898_p8 = pneg %p1897_p7 }
 0x614   : > { %p1904_p13 = por %p1903_p12, %p1902_p11 }
 0x616   : > { %p1905_p0 = pnand %p1904_p13, %p1898_p8 }
 0x618   : > { %1908 = shalt.err (!%p1905_p0)
}
 0x619   : > { %1817 = dma.vmem_to_hbm [thread:$0]  (%p2042_p5), %s2373_s21, 128, %s2371_s8, %s1630_s19  }
 0x61a PF: > { %p1823_p1 = scmp.ge.s32.totalorder %s1943_s27, 2  ;;  %s1656_s22 = sand.u32 1, %s1931_s24  }
 0x61b   : > { %s1657_s23 = scalar_lea.sflag [#allocation3], %s1656_s22 }
 0x61c   : > { %p1820_p2 = pnand %p1823_p1, %p2046_p6 }
 0x61e   : > { %1926 = dma.done.wait (!%p1820_p2), %s1657_s23, 128  }
 0x61f   : > { %1928 = vsyncadd (!%p1820_p2), %s1657_s23, 4294967168  ;;  %p17_p3 = scmp.ge.s32.totalorder %s2029_s30, 4   ;;  %s2434_s24 = smov %s1935_s25 }
 0x620   : > { %s2435_s25 = smov %s1939_s26  ;;  %s2436_s26 = smov %s2040_s10 }
 0x621   : > { %s2437_s27 = smov %s2029_s30  ;;  %19 = sbr.rel (!%p17_p3) target bundleno = 3 (0x3), region = 83 }
 0x628   :  { %1662 = vsyncpa [#allocation3], 1 }
 0x629   :  { %1664 = vsyncpa [#allocation3 + $0x1], 1 }

</bundles_post_ra>
